<compile_context>
chip_gen: v5e
topology: v5e:2x2
jax: 0.10.0
libtpu: 0.0.40
codegen_flags: <defaults>
</compile_context>

<pallas_src>
import functools

import numpy as np
import jax
import jax.numpy as jnp
from jax.experimental import pallas as pl
from jax.experimental.pallas import tpu as pltpu

# Small, deterministic configuration consistent with the module defaults.
N = 2              # batch
IN_CHANNELS = 4
L = 16             # sequence length (divisible by 4: two MaxPool1d(2) stages)
CONV_DIM = 32
HS = (64, 32)
NUM_CLASSES = 5

_W_ORDER = ("conv1", "conv2_0", "conv2_1", "conv2_2", "conv3", "conv4",
            "conv5_0", "conv5_1", "conv5_2", "conv6", "lin1", "lin2", "final")
_B_ORDER = ("conv1", "conv2", "conv3", "conv4", "conv5", "conv6",
            "lin1", "lin2", "final")


def _round8(n):
    return (n + 7) // 8 * 8


# --------------------------------------------------------------------------- #
# Kernel
# --------------------------------------------------------------------------- #
def _cnn2019_kernel(x_ref, w_ref, b_ref, out_ref, *, batch, length,
                    w_layout, b_layout):
    f32 = jnp.float32
    relu = lambda v: jnp.maximum(v, 0.0)

    def W(name):                                # static slice into the weight slab
        off, r, c = w_layout[name]
        return w_ref[off:off + r, :c]

    def B(name):                                # (1, c) bias row from the bias slab
        row, c = b_layout[name]
        return b_ref[row:row + 1, :c]

    def mm(a, b):
        return jnp.dot(a, b, preferred_element_type=f32)

    def iota(shape, dim):
        return jax.lax.broadcasted_iota(jnp.int32, shape, dim)

    def sel(cond):                              # 0/1 selection matrix from a predicate
        return jnp.where(cond, 1.0, 0.0).astype(f32)

    # ---- fold NCL -> (batch*length, C_in) into the kernel --------------------
    # transpose(x[b]) is computed on the MXU: eye(L) contracted with x[b] over
    # the last dims (A @ B.T pattern), so no vector-transpose / relayout needed.
    eye_l = sel(iota((length, length), 0) == iota((length, length), 1))
    dn = (((1,), (1,)), ((), ()))               # contract last dim with last dim
    x_rows = jnp.concatenate(
        [jax.lax.dot_general(eye_l, x_ref[b], dn, preferred_element_type=f32)
         for b in range(batch)], axis=0)        # (batch*length, C_in)

    def conv1x1(h, name):                       # Conv1d(kernel_size=1, padding=0)
        return mm(h, W(name)) + B(name)

    def conv3x1(h, name, rows, seg):            # Conv1d(kernel_size=3, padding=1)
        # out[l] = h[l-1] @ W0 + h[l] @ W1 + h[l+1] @ W2 + b, zero padded at the
        # ends of each per-batch segment.  The +-1 shifts are 0/1 shift-matrix
        # matmuls (no sublane concat / roll / strided slice, no scratch stores).
        ii, jj = iota((rows, rows), 0), iota((rows, rows), 1)
        prev_c = jj == ii - 1
        next_c = jj == ii + 1
        for b in range(rows // seg):            # mask the batch-segment borders
            prev_c = prev_c & (ii != b * seg)
            next_c = next_c & (ii != (b + 1) * seg - 1)
        h_prev = mm(sel(prev_c), h)
        h_next = mm(sel(next_c), h)
        return (mm(h_prev, W(name + "_0")) + mm(h, W(name + "_1"))
                + mm(h_next, W(name + "_2")) + B(name))

    def maxpool2(h, rows):                      # MaxPool1d(2): pairwise row max
        ro = rows // 2
        ii, jj = iota((ro, rows), 0), iota((ro, rows), 1)
        return jnp.maximum(mm(sel(jj == 2 * ii), h),
                           mm(sel(jj == 2 * ii + 1), h))

    rows0, seg0 = batch * length, length
    x1 = relu(conv1x1(x_rows, "conv1"))                 # conv1 + relu
    t = relu(conv3x1(x1, "conv2", rows0, seg0))         # conv2 + relu
    t = relu(conv1x1(t, "conv3")) + x1                  # conv3 + relu, residual add
    h = maxpool2(t, rows0)                              # mp1

    rows1, seg1 = rows0 // 2, seg0 // 2
    x2 = relu(conv1x1(h, "conv4"))                      # conv4 + relu
    t = relu(conv3x1(x2, "conv5", rows1, seg1))         # conv5 + relu
    t = relu(conv1x1(t, "conv6")) + x2                  # conv6 + relu, residual add
    h = maxpool2(t, rows1)                              # mp2

    rows2, seg2 = rows1 // 2, seg1 // 2
    # AdaptiveAvgPool1d(1) + flatten == per-batch mean over the seg2 remaining
    # rows, expressed as one (batch, rows2) averaging matmul.
    bi, ri = iota((batch, rows2), 0), iota((batch, rows2), 1)
    avg = sel((ri >= bi * seg2) & (ri < (bi + 1) * seg2)) * (1.0 / seg2)
    z = mm(avg, h)                                      # (batch, conv_dim)

    # TODO(synk): nn.Dropout(0.2) in the linear blocks is train-only; identity here.
    z = relu(mm(z, W("lin1")) + B("lin1"))
    z = relu(mm(z, W("lin2")) + B("lin2"))
    out_ref[...] = mm(z, W("final")) + B("final")       # final linear, no relu


# --------------------------------------------------------------------------- #
# Wrapper
# --------------------------------------------------------------------------- #
def cnn2019_forward(x_ncl, w_slab, b_slab, w_layout, b_layout,
                    num_classes=NUM_CLASSES):
    """x_ncl: (N, C_in, L) float32 in PyTorch Conv1d layout. Returns (N, num_classes)."""
    n, _, length = x_ncl.shape
    assert length % 4 == 0, "two MaxPool1d(2) stages require L divisible by 4"

    kernel = functools.partial(_cnn2019_kernel, batch=n, length=length,
                               w_layout=w_layout, b_layout=b_layout)
    vmem = pl.BlockSpec(memory_space=pltpu.MemorySpace.VMEM)
    return pl.pallas_call(
        kernel,
        out_shape=jax.ShapeDtypeStruct((n, num_classes), jnp.float32),
        # No grid: whole (tiny) operands live in VMEM for a single invocation.
        in_specs=[vmem, vmem, vmem],
        out_specs=vmem,
    )(x_ncl.astype(jnp.float32), w_slab, b_slab)


# --------------------------------------------------------------------------- #
# Parameters: init + host-side packing into two slabs
# --------------------------------------------------------------------------- #
def init_params(key, in_channels=IN_CHANNELS, conv_dim=CONV_DIM, hs=HS,
                num_classes=NUM_CLASSES):
    keys = iter(jax.random.split(key, 26))

    def u(shape, fan_in):
        bound = 1.0 / np.sqrt(fan_in)
        return jax.random.uniform(next(keys), shape, jnp.float32, -bound, bound)

    p = {}
    # Conv1d weights stored channels-last: tap t is (C_in, C_out).
    p["conv1_w"] = u((in_channels, conv_dim), in_channels)
    p["conv1_b"] = u((conv_dim,), in_channels)
    p["conv2_w"] = tuple(u((conv_dim, conv_dim), 3 * conv_dim) for _ in range(3))
    p["conv2_b"] = u((conv_dim,), 3 * conv_dim)
    p["conv3_w"] = u((conv_dim, conv_dim), conv_dim)
    p["conv3_b"] = u((conv_dim,), conv_dim)
    p["conv4_w"] = u((conv_dim, conv_dim), conv_dim)
    p["conv4_b"] = u((conv_dim,), conv_dim)
    p["conv5_w"] = tuple(u((conv_dim, conv_dim), 3 * conv_dim) for _ in range(3))
    p["conv5_b"] = u((conv_dim,), 3 * conv_dim)
    p["conv6_w"] = u((conv_dim, conv_dim), conv_dim)
    p["conv6_b"] = u((conv_dim,), conv_dim)
    p["lin1_w"] = u((conv_dim, hs[0]), conv_dim)
    p["lin1_b"] = u((hs[0],), conv_dim)
    p["lin2_w"] = u((hs[0], hs[1]), hs[0])
    p["lin2_b"] = u((hs[1],), hs[0])
    p["final_w"] = u((hs[1], num_classes), hs[1])
    p["final_b"] = u((num_classes,), hs[1])
    return p


def _weight_mats(params):
    return {
        "conv1": params["conv1_w"],
        "conv2_0": params["conv2_w"][0], "conv2_1": params["conv2_w"][1],
        "conv2_2": params["conv2_w"][2],
        "conv3": params["conv3_w"], "conv4": params["conv4_w"],
        "conv5_0": params["conv5_w"][0], "conv5_1": params["conv5_w"][1],
        "conv5_2": params["conv5_w"][2],
        "conv6": params["conv6_w"],
        "lin1": params["lin1_w"], "lin2": params["lin2_w"],
        "final": params["final_w"],
    }


def pack_params(params):
    """Pack 13 weight matrices / 9 bias vectors into two f32 slabs (done once,
    host-side) so the kernel needs only 3 input DMAs and static .at[] slices."""
    mats = _weight_mats(params)
    cols = max(int(m.shape[1]) for m in mats.values())

    w_layout, off = {}, 0
    for name in _W_ORDER:
        r, c = (int(s) for s in mats[name].shape)
        w_layout[name] = (off, r, c)
        off += _round8(r)                      # keep every section 8-row aligned
    w_slab = np.zeros((off, cols), np.float32)
    for name, (o, r, c) in w_layout.items():
        w_slab[o:o + r, :c] = np.asarray(mats[name], np.float32)

    b_layout = {}
    b_slab = np.zeros((_round8(len(_B_ORDER)), cols), np.float32)
    for i, name in enumerate(_B_ORDER):
        vec = np.asarray(params[name + "_b"], np.float32)
        b_layout[name] = (i, int(vec.shape[0]))
        b_slab[i, :vec.shape[0]] = vec

    return jnp.asarray(w_slab), jnp.asarray(b_slab), w_layout, b_layout


# --------------------------------------------------------------------------- #
# Pure-JAX reference (mirrors CNN2019.forward)
# --------------------------------------------------------------------------- #
def reference_forward(x_ncl, params):
    p = params
    hi = jax.lax.Precision.HIGHEST
    relu = lambda v: jnp.maximum(v, 0.0)
    x = jnp.transpose(x_ncl, (0, 2, 1)).astype(jnp.float32)   # (N, L, C)

    def k1(h, w, b):
        return jnp.einsum("nlc,cd->nld", h, w, precision=hi) + b

    def k3(h, taps, b):
        z = jnp.zeros_like(h[:, :1, :])
        hp = jnp.concatenate([z, h[:, :-1, :]], axis=1)
        hn = jnp.concatenate([h[:, 1:, :], z], axis=1)
        return (jnp.einsum("nlc,cd->nld", hp, taps[0], precision=hi)
                + jnp.einsum("nlc,cd->nld", h, taps[1], precision=hi)
                + jnp.einsum("nlc,cd->nld", hn, taps[2], precision=hi) + b)

    def mp(h):
        return jnp.maximum(h[:, 0::2, :], h[:, 1::2, :])

    x1 = relu(k1(x, p["conv1_w"], p["conv1_b"]))
    t = relu(k3(x1, p["conv2_w"], p["conv2_b"]))
    t = relu(k1(t, p["conv3_w"], p["conv3_b"])) + x1
    h = mp(t)
    x2 = relu(k1(h, p["conv4_w"], p["conv4_b"]))
    t = relu(k3(x2, p["conv5_w"], p["conv5_b"]))
    t = relu(k1(t, p["conv6_w"], p["conv6_b"])) + x2
    h = mp(t)
    h = jnp.mean(h, axis=1)                                   # aap(1) + flatten
    h = relu(jnp.dot(h, p["lin1_w"], precision=hi) + p["lin1_b"])
    h = relu(jnp.dot(h, p["lin2_w"], precision=hi) + p["lin2_b"])
    return jnp.dot(h, p["final_w"], precision=hi) + p["final_b"]


if __name__ == "__main__":
    key = jax.random.PRNGKey(0)
    kx, kp = jax.random.split(key)
    # PyTorch-convention Conv1d input: (batch, in_channels, length)
    x = jax.random.normal(kx, (N, IN_CHANNELS, L), jnp.float32)
    params = init_params(kp)
    w_slab, b_slab, w_layout, b_layout = pack_params(params)

    y = cnn2019_forward(x, w_slab, b_slab, w_layout, b_layout)
    y = jax.block_until_ready(y)

    y_ref = reference_forward(x, params)
    assert y.shape == (N, NUM_CLASSES), y.shape
    err = np.max(np.abs(np.asarray(y) - np.asarray(y_ref)))
    assert np.allclose(np.asarray(y), np.asarray(y_ref), atol=2e-3, rtol=2e-3), err
    print("KERNEL_OK")
</pallas_src>

<mosaic_0001>
module attributes {stable_mosaic.version = 11 : i64} {
  func.func @_cnn2019_kernel(%arg0: memref<2x4x16xf32, #tpu.memory_space<vmem>>, %arg1: memref<424x64xf32, #tpu.memory_space<vmem>>, %arg2: memref<16x64xf32, #tpu.memory_space<vmem>>, %arg3: memref<2x5xf32, #tpu.memory_space<vmem>>) attributes {dimension_semantics = [], scalar_prefetch = 0 : i64, scratch_operands = 0 : i64, tpu.core_type = #tpu.core_type<tc>} {
    %0 = tpu.iota {dimensions = array<i32: 0>} : vector<16x16xi32>
    %1 = tpu.iota {dimensions = array<i32: 1>} : vector<16x16xi32>
    %2 = arith.cmpi eq, %0, %1 : vector<16x16xi32>
    %cst = arith.constant 1.000000e+00 : f32
    %cst_0 = arith.constant 0.000000e+00 : f32
    %3 = vector.broadcast %cst : f32 to vector<16x16xf32>
    %4 = vector.broadcast %cst_0 : f32 to vector<16x16xf32>
    %5 = arith.select %2, %3, %4 : vector<16x16xi1>, vector<16x16xf32>
    %c0 = arith.constant 0 : index
    %c0_1 = arith.constant 0 : index
    %c0_2 = arith.constant 0 : index
    %6 = vector.load %arg0[%c0, %c0_1, %c0_2] : memref<2x4x16xf32, #tpu.memory_space<vmem>>, vector<1x4x16xf32>
    %7 = vector.shape_cast %6 : vector<1x4x16xf32> to vector<4x16xf32>
    %cst_3 = arith.constant dense<0.000000e+00> : vector<16x4xf32>
    %8 = tpu.matmul %5, %7, %cst_3 {dimension_numbers = #tpu.dot_dimension_numbers<[1], [1], [0], [0], [0, 0, 1, 0], [], []>} : vector<16x16xf32>, vector<4x16xf32>, vector<16x4xf32> -> vector<16x4xf32>
    %c1 = arith.constant 1 : index
    %c0_4 = arith.constant 0 : index
    %c0_5 = arith.constant 0 : index
    %9 = vector.load %arg0[%c1, %c0_4, %c0_5] : memref<2x4x16xf32, #tpu.memory_space<vmem>>, vector<1x4x16xf32>
    %10 = vector.shape_cast %9 : vector<1x4x16xf32> to vector<4x16xf32>
    %cst_6 = arith.constant dense<0.000000e+00> : vector<16x4xf32>
    %11 = tpu.matmul %5, %10, %cst_6 {dimension_numbers = #tpu.dot_dimension_numbers<[1], [1], [0], [0], [0, 0, 1, 0], [], []>} : vector<16x16xf32>, vector<4x16xf32>, vector<16x4xf32> -> vector<16x4xf32>
    %12 = tpu.concatenate %8, %11 in 0 : vector<16x4xf32>, vector<16x4xf32> -> vector<32x4xf32>
    %c0_7 = arith.constant 0 : index
    %c0_8 = arith.constant 0 : index
    %13 = vector.load %arg1[%c0_7, %c0_8] : memref<424x64xf32, #tpu.memory_space<vmem>>, vector<4x32xf32>
    %cst_9 = arith.constant dense<0.000000e+00> : vector<32x32xf32>
    %14 = tpu.matmul %12, %13, %cst_9 {dimension_numbers = #tpu.dot_dimension_numbers<[1], [0], [0], [1], [0, 0, 1, 1], [], []>} : vector<32x4xf32>, vector<4x32xf32>, vector<32x32xf32> -> vector<32x32xf32>
    %c0_10 = arith.constant 0 : index
    %c0_11 = arith.constant 0 : index
    %15 = vector.load %arg2[%c0_10, %c0_11] : memref<16x64xf32, #tpu.memory_space<vmem>>, vector<1x32xf32>
    %16 = vector.broadcast %15 : vector<1x32xf32> to vector<32x32xf32>
    %17 = arith.addf %14, %16 : vector<32x32xf32>
    %cst_12 = arith.constant 0.000000e+00 : f32
    %18 = vector.broadcast %cst_12 : f32 to vector<32x32xf32>
    %19 = arith.maximumf %17, %18 : vector<32x32xf32>
    %20 = tpu.iota {dimensions = array<i32: 0>} : vector<32x32xi32>
    %21 = tpu.iota {dimensions = array<i32: 1>} : vector<32x32xi32>
    %c1_i32 = arith.constant 1 : i32
    %22 = vector.broadcast %c1_i32 : i32 to vector<32x32xi32>
    %23 = arith.subi %20, %22 : vector<32x32xi32>
    %24 = arith.cmpi eq, %21, %23 : vector<32x32xi32>
    %c1_i32_13 = arith.constant 1 : i32
    %25 = vector.broadcast %c1_i32_13 : i32 to vector<32x32xi32>
    %26 = arith.addi %20, %25 : vector<32x32xi32>
    %27 = arith.cmpi eq, %21, %26 : vector<32x32xi32>
    %c0_i32 = arith.constant 0 : i32
    %28 = vector.broadcast %c0_i32 : i32 to vector<32x32xi32>
    %29 = arith.cmpi ne, %20, %28 : vector<32x32xi32>
    %30 = arith.andi %24, %29 : vector<32x32xi1>
    %c15_i32 = arith.constant 15 : i32
    %31 = vector.broadcast %c15_i32 : i32 to vector<32x32xi32>
    %32 = arith.cmpi ne, %20, %31 : vector<32x32xi32>
    %33 = arith.andi %27, %32 : vector<32x32xi1>
    %c16_i32 = arith.constant 16 : i32
    %34 = vector.broadcast %c16_i32 : i32 to vector<32x32xi32>
    %35 = arith.cmpi ne, %20, %34 : vector<32x32xi32>
    %36 = arith.andi %30, %35 : vector<32x32xi1>
    %c31_i32 = arith.constant 31 : i32
    %37 = vector.broadcast %c31_i32 : i32 to vector<32x32xi32>
    %38 = arith.cmpi ne, %20, %37 : vector<32x32xi32>
    %39 = arith.andi %33, %38 : vector<32x32xi1>
    %cst_14 = arith.constant 1.000000e+00 : f32
    %cst_15 = arith.constant 0.000000e+00 : f32
    %40 = vector.broadcast %cst_14 : f32 to vector<32x32xf32>
    %41 = vector.broadcast %cst_15 : f32 to vector<32x32xf32>
    %42 = arith.select %36, %40, %41 : vector<32x32xi1>, vector<32x32xf32>
    %cst_16 = arith.constant dense<0.000000e+00> : vector<32x32xf32>
    %43 = tpu.matmul %42, %19, %cst_16 {dimension_numbers = #tpu.dot_dimension_numbers<[1], [0], [0], [1], [0, 0, 1, 1], [], []>} : vector<32x32xf32>, vector<32x32xf32>, vector<32x32xf32> -> vector<32x32xf32>
    %cst_17 = arith.constant 1.000000e+00 : f32
    %cst_18 = arith.constant 0.000000e+00 : f32
    %44 = vector.broadcast %cst_17 : f32 to vector<32x32xf32>
    %45 = vector.broadcast %cst_18 : f32 to vector<32x32xf32>
    %46 = arith.select %39, %44, %45 : vector<32x32xi1>, vector<32x32xf32>
    %cst_19 = arith.constant dense<0.000000e+00> : vector<32x32xf32>
    %47 = tpu.matmul %46, %19, %cst_19 {dimension_numbers = #tpu.dot_dimension_numbers<[1], [0], [0], [1], [0, 0, 1, 1], [], []>} : vector<32x32xf32>, vector<32x32xf32>, vector<32x32xf32> -> vector<32x32xf32>
    %c8 = arith.constant 8 : index
    %c0_20 = arith.constant 0 : index
    %48 = vector.load %arg1[%c8, %c0_20] : memref<424x64xf32, #tpu.memory_space<vmem>>, vector<32x32xf32>
    %cst_21 = arith.constant dense<0.000000e+00> : vector<32x32xf32>
    %49 = tpu.matmul %43, %48, %cst_21 {dimension_numbers = #tpu.dot_dimension_numbers<[1], [0], [0], [1], [0, 0, 1, 1], [], []>} : vector<32x32xf32>, vector<32x32xf32>, vector<32x32xf32> -> vector<32x32xf32>
    %c40 = arith.constant 40 : index
    %c0_22 = arith.constant 0 : index
    %50 = vector.load %arg1[%c40, %c0_22] : memref<424x64xf32, #tpu.memory_space<vmem>>, vector<32x32xf32>
    %cst_23 = arith.constant dense<0.000000e+00> : vector<32x32xf32>
    %51 = tpu.matmul %19, %50, %cst_23 {dimension_numbers = #tpu.dot_dimension_numbers<[1], [0], [0], [1], [0, 0, 1, 1], [], []>} : vector<32x32xf32>, vector<32x32xf32>, vector<32x32xf32> -> vector<32x32xf32>
    %52 = arith.addf %49, %51 : vector<32x32xf32>
    %c72 = arith.constant 72 : index
    %c0_24 = arith.constant 0 : index
    %53 = vector.load %arg1[%c72, %c0_24] : memref<424x64xf32, #tpu.memory_space<vmem>>, vector<32x32xf32>
    %cst_25 = arith.constant dense<0.000000e+00> : vector<32x32xf32>
    %54 = tpu.matmul %47, %53, %cst_25 {dimension_numbers = #tpu.dot_dimension_numbers<[1], [0], [0], [1], [0, 0, 1, 1], [], []>} : vector<32x32xf32>, vector<32x32xf32>, vector<32x32xf32> -> vector<32x32xf32>
    %55 = arith.addf %52, %54 : vector<32x32xf32>
    %c1_26 = arith.constant 1 : index
    %c0_27 = arith.constant 0 : index
    %56 = vector.load %arg2[%c1_26, %c0_27] : memref<16x64xf32, #tpu.memory_space<vmem>>, vector<1x32xf32>
    %57 = vector.broadcast %56 : vector<1x32xf32> to vector<32x32xf32>
    %58 = arith.addf %55, %57 : vector<32x32xf32>
    %cst_28 = arith.constant 0.000000e+00 : f32
    %59 = vector.broadcast %cst_28 : f32 to vector<32x32xf32>
    %60 = arith.maximumf %58, %59 : vector<32x32xf32>
    %c104 = arith.constant 104 : index
    %c0_29 = arith.constant 0 : index
    %61 = vector.load %arg1[%c104, %c0_29] : memref<424x64xf32, #tpu.memory_space<vmem>>, vector<32x32xf32>
    %cst_30 = arith.constant dense<0.000000e+00> : vector<32x32xf32>
    %62 = tpu.matmul %60, %61, %cst_30 {dimension_numbers = #tpu.dot_dimension_numbers<[1], [0], [0], [1], [0, 0, 1, 1], [], []>} : vector<32x32xf32>, vector<32x32xf32>, vector<32x32xf32> -> vector<32x32xf32>
    %c2 = arith.constant 2 : index
    %c0_31 = arith.constant 0 : index
    %63 = vector.load %arg2[%c2, %c0_31] : memref<16x64xf32, #tpu.memory_space<vmem>>, vector<1x32xf32>
    %64 = vector.broadcast %63 : vector<1x32xf32> to vector<32x32xf32>
    %65 = arith.addf %62, %64 : vector<32x32xf32>
    %cst_32 = arith.constant 0.000000e+00 : f32
    %66 = vector.broadcast %cst_32 : f32 to vector<32x32xf32>
    %67 = arith.maximumf %65, %66 : vector<32x32xf32>
    %68 = arith.addf %67, %19 : vector<32x32xf32>
    %69 = tpu.iota {dimensions = array<i32: 0>} : vector<16x32xi32>
    %70 = tpu.iota {dimensions = array<i32: 1>} : vector<16x32xi32>
    %c2_i32 = arith.constant 2 : i32
    %71 = vector.broadcast %c2_i32 : i32 to vector<16x32xi32>
    %72 = arith.muli %71, %69 : vector<16x32xi32>
    %73 = arith.cmpi eq, %70, %72 : vector<16x32xi32>
    %cst_33 = arith.constant 1.000000e+00 : f32
    %cst_34 = arith.constant 0.000000e+00 : f32
    %74 = vector.broadcast %cst_33 : f32 to vector<16x32xf32>
    %75 = vector.broadcast %cst_34 : f32 to vector<16x32xf32>
    %76 = arith.select %73, %74, %75 : vector<16x32xi1>, vector<16x32xf32>
    %cst_35 = arith.constant dense<0.000000e+00> : vector<16x32xf32>
    %77 = tpu.matmul %76, %68, %cst_35 {dimension_numbers = #tpu.dot_dimension_numbers<[1], [0], [0], [1], [0, 0, 1, 1], [], []>} : vector<16x32xf32>, vector<32x32xf32>, vector<16x32xf32> -> vector<16x32xf32>
    %c2_i32_36 = arith.constant 2 : i32
    %78 = vector.broadcast %c2_i32_36 : i32 to vector<16x32xi32>
    %79 = arith.muli %78, %69 : vector<16x32xi32>
    %c1_i32_37 = arith.constant 1 : i32
    %80 = vector.broadcast %c1_i32_37 : i32 to vector<16x32xi32>
    %81 = arith.addi %79, %80 : vector<16x32xi32>
    %82 = arith.cmpi eq, %70, %81 : vector<16x32xi32>
    %cst_38 = arith.constant 1.000000e+00 : f32
    %cst_39 = arith.constant 0.000000e+00 : f32
    %83 = vector.broadcast %cst_38 : f32 to vector<16x32xf32>
    %84 = vector.broadcast %cst_39 : f32 to vector<16x32xf32>
    %85 = arith.select %82, %83, %84 : vector<16x32xi1>, vector<16x32xf32>
    %cst_40 = arith.constant dense<0.000000e+00> : vector<16x32xf32>
    %86 = tpu.matmul %85, %68, %cst_40 {dimension_numbers = #tpu.dot_dimension_numbers<[1], [0], [0], [1], [0, 0, 1, 1], [], []>} : vector<16x32xf32>, vector<32x32xf32>, vector<16x32xf32> -> vector<16x32xf32>
    %87 = arith.maximumf %77, %86 : vector<16x32xf32>
    %c136 = arith.constant 136 : index
    %c0_41 = arith.constant 0 : index
    %88 = vector.load %arg1[%c136, %c0_41] : memref<424x64xf32, #tpu.memory_space<vmem>>, vector<32x32xf32>
    %cst_42 = arith.constant dense<0.000000e+00> : vector<16x32xf32>
    %89 = tpu.matmul %87, %88, %cst_42 {dimension_numbers = #tpu.dot_dimension_numbers<[1], [0], [0], [1], [0, 0, 1, 1], [], []>} : vector<16x32xf32>, vector<32x32xf32>, vector<16x32xf32> -> vector<16x32xf32>
    %c3 = arith.constant 3 : index
    %c0_43 = arith.constant 0 : index
    %90 = vector.load %arg2[%c3, %c0_43] : memref<16x64xf32, #tpu.memory_space<vmem>>, vector<1x32xf32>
    %91 = vector.broadcast %90 : vector<1x32xf32> to vector<16x32xf32>
    %92 = arith.addf %89, %91 : vector<16x32xf32>
    %cst_44 = arith.constant 0.000000e+00 : f32
    %93 = vector.broadcast %cst_44 : f32 to vector<16x32xf32>
    %94 = arith.maximumf %92, %93 : vector<16x32xf32>
    %95 = tpu.iota {dimensions = array<i32: 0>} : vector<16x16xi32>
    %96 = tpu.iota {dimensions = array<i32: 1>} : vector<16x16xi32>
    %c1_i32_45 = arith.constant 1 : i32
    %97 = vector.broadcast %c1_i32_45 : i32 to vector<16x16xi32>
    %98 = arith.subi %95, %97 : vector<16x16xi32>
    %99 = arith.cmpi eq, %96, %98 : vector<16x16xi32>
    %c1_i32_46 = arith.constant 1 : i32
    %100 = vector.broadcast %c1_i32_46 : i32 to vector<16x16xi32>
    %101 = arith.addi %95, %100 : vector<16x16xi32>
    %102 = arith.cmpi eq, %96, %101 : vector<16x16xi32>
    %c0_i32_47 = arith.constant 0 : i32
    %103 = vector.broadcast %c0_i32_47 : i32 to vector<16x16xi32>
    %104 = arith.cmpi ne, %95, %103 : vector<16x16xi32>
    %105 = arith.andi %99, %104 : vector<16x16xi1>
    %c7_i32 = arith.constant 7 : i32
    %106 = vector.broadcast %c7_i32 : i32 to vector<16x16xi32>
    %107 = arith.cmpi ne, %95, %106 : vector<16x16xi32>
    %108 = arith.andi %102, %107 : vector<16x16xi1>
    %c8_i32 = arith.constant 8 : i32
    %109 = vector.broadcast %c8_i32 : i32 to vector<16x16xi32>
    %110 = arith.cmpi ne, %95, %109 : vector<16x16xi32>
    %111 = arith.andi %105, %110 : vector<16x16xi1>
    %c15_i32_48 = arith.constant 15 : i32
    %112 = vector.broadcast %c15_i32_48 : i32 to vector<16x16xi32>
    %113 = arith.cmpi ne, %95, %112 : vector<16x16xi32>
    %114 = arith.andi %108, %113 : vector<16x16xi1>
    %cst_49 = arith.constant 1.000000e+00 : f32
    %cst_50 = arith.constant 0.000000e+00 : f32
    %115 = vector.broadcast %cst_49 : f32 to vector<16x16xf32>
    %116 = vector.broadcast %cst_50 : f32 to vector<16x16xf32>
    %117 = arith.select %111, %115, %116 : vector<16x16xi1>, vector<16x16xf32>
    %cst_51 = arith.constant dense<0.000000e+00> : vector<16x32xf32>
    %118 = tpu.matmul %117, %94, %cst_51 {dimension_numbers = #tpu.dot_dimension_numbers<[1], [0], [0], [1], [0, 0, 1, 1], [], []>} : vector<16x16xf32>, vector<16x32xf32>, vector<16x32xf32> -> vector<16x32xf32>
    %cst_52 = arith.constant 1.000000e+00 : f32
    %cst_53 = arith.constant 0.000000e+00 : f32
    %119 = vector.broadcast %cst_52 : f32 to vector<16x16xf32>
    %120 = vector.broadcast %cst_53 : f32 to vector<16x16xf32>
    %121 = arith.select %114, %119, %120 : vector<16x16xi1>, vector<16x16xf32>
    %cst_54 = arith.constant dense<0.000000e+00> : vector<16x32xf32>
    %122 = tpu.matmul %121, %94, %cst_54 {dimension_numbers = #tpu.dot_dimension_numbers<[1], [0], [0], [1], [0, 0, 1, 1], [], []>} : vector<16x16xf32>, vector<16x32xf32>, vector<16x32xf32> -> vector<16x32xf32>
    %c168 = arith.constant 168 : index
    %c0_55 = arith.constant 0 : index
    %123 = vector.load %arg1[%c168, %c0_55] : memref<424x64xf32, #tpu.memory_space<vmem>>, vector<32x32xf32>
    %cst_56 = arith.constant dense<0.000000e+00> : vector<16x32xf32>
    %124 = tpu.matmul %118, %123, %cst_56 {dimension_numbers = #tpu.dot_dimension_numbers<[1], [0], [0], [1], [0, 0, 1, 1], [], []>} : vector<16x32xf32>, vector<32x32xf32>, vector<16x32xf32> -> vector<16x32xf32>
    %c200 = arith.constant 200 : index
    %c0_57 = arith.constant 0 : index
    %125 = vector.load %arg1[%c200, %c0_57] : memref<424x64xf32, #tpu.memory_space<vmem>>, vector<32x32xf32>
    %cst_58 = arith.constant dense<0.000000e+00> : vector<16x32xf32>
    %126 = tpu.matmul %94, %125, %cst_58 {dimension_numbers = #tpu.dot_dimension_numbers<[1], [0], [0], [1], [0, 0, 1, 1], [], []>} : vector<16x32xf32>, vector<32x32xf32>, vector<16x32xf32> -> vector<16x32xf32>
    %127 = arith.addf %124, %126 : vector<16x32xf32>
    %c232 = arith.constant 232 : index
    %c0_59 = arith.constant 0 : index
    %128 = vector.load %arg1[%c232, %c0_59] : memref<424x64xf32, #tpu.memory_space<vmem>>, vector<32x32xf32>
    %cst_60 = arith.constant dense<0.000000e+00> : vector<16x32xf32>
    %129 = tpu.matmul %122, %128, %cst_60 {dimension_numbers = #tpu.dot_dimension_numbers<[1], [0], [0], [1], [0, 0, 1, 1], [], []>} : vector<16x32xf32>, vector<32x32xf32>, vector<16x32xf32> -> vector<16x32xf32>
    %130 = arith.addf %127, %129 : vector<16x32xf32>
    %c4 = arith.constant 4 : index
    %c0_61 = arith.constant 0 : index
    %131 = vector.load %arg2[%c4, %c0_61] : memref<16x64xf32, #tpu.memory_space<vmem>>, vector<1x32xf32>
    %132 = vector.broadcast %131 : vector<1x32xf32> to vector<16x32xf32>
    %133 = arith.addf %130, %132 : vector<16x32xf32>
    %cst_62 = arith.constant 0.000000e+00 : f32
    %134 = vector.broadcast %cst_62 : f32 to vector<16x32xf32>
    %135 = arith.maximumf %133, %134 : vector<16x32xf32>
    %c264 = arith.constant 264 : index
    %c0_63 = arith.constant 0 : index
    %136 = vector.load %arg1[%c264, %c0_63] : memref<424x64xf32, #tpu.memory_space<vmem>>, vector<32x32xf32>
    %cst_64 = arith.constant dense<0.000000e+00> : vector<16x32xf32>
    %137 = tpu.matmul %135, %136, %cst_64 {dimension_numbers = #tpu.dot_dimension_numbers<[1], [0], [0], [1], [0, 0, 1, 1], [], []>} : vector<16x32xf32>, vector<32x32xf32>, vector<16x32xf32> -> vector<16x32xf32>
    %c5 = arith.constant 5 : index
    %c0_65 = arith.constant 0 : index
    %138 = vector.load %arg2[%c5, %c0_65] : memref<16x64xf32, #tpu.memory_space<vmem>>, vector<1x32xf32>
    %139 = vector.broadcast %138 : vector<1x32xf32> to vector<16x32xf32>
    %140 = arith.addf %137, %139 : vector<16x32xf32>
    %cst_66 = arith.constant 0.000000e+00 : f32
    %141 = vector.broadcast %cst_66 : f32 to vector<16x32xf32>
    %142 = arith.maximumf %140, %141 : vector<16x32xf32>
    %143 = arith.addf %142, %94 : vector<16x32xf32>
    %144 = tpu.iota {dimensions = array<i32: 0>} : vector<8x16xi32>
    %145 = tpu.iota {dimensions = array<i32: 1>} : vector<8x16xi32>
    %c2_i32_67 = arith.constant 2 : i32
    %146 = vector.broadcast %c2_i32_67 : i32 to vector<8x16xi32>
    %147 = arith.muli %146, %144 : vector<8x16xi32>
    %148 = arith.cmpi eq, %145, %147 : vector<8x16xi32>
    %cst_68 = arith.constant 1.000000e+00 : f32
    %cst_69 = arith.constant 0.000000e+00 : f32
    %149 = vector.broadcast %cst_68 : f32 to vector<8x16xf32>
    %150 = vector.broadcast %cst_69 : f32 to vector<8x16xf32>
    %151 = arith.select %148, %149, %150 : vector<8x16xi1>, vector<8x16xf32>
    %cst_70 = arith.constant dense<0.000000e+00> : vector<8x32xf32>
    %152 = tpu.matmul %151, %143, %cst_70 {dimension_numbers = #tpu.dot_dimension_numbers<[1], [0], [0], [1], [0, 0, 1, 1], [], []>} : vector<8x16xf32>, vector<16x32xf32>, vector<8x32xf32> -> vector<8x32xf32>
    %c2_i32_71 = arith.constant 2 : i32
    %153 = vector.broadcast %c2_i32_71 : i32 to vector<8x16xi32>
    %154 = arith.muli %153, %144 : vector<8x16xi32>
    %c1_i32_72 = arith.constant 1 : i32
    %155 = vector.broadcast %c1_i32_72 : i32 to vector<8x16xi32>
    %156 = arith.addi %154, %155 : vector<8x16xi32>
    %157 = arith.cmpi eq, %145, %156 : vector<8x16xi32>
    %cst_73 = arith.constant 1.000000e+00 : f32
    %cst_74 = arith.constant 0.000000e+00 : f32
    %158 = vector.broadcast %cst_73 : f32 to vector<8x16xf32>
    %159 = vector.broadcast %cst_74 : f32 to vector<8x16xf32>
    %160 = arith.select %157, %158, %159 : vector<8x16xi1>, vector<8x16xf32>
    %cst_75 = arith.constant dense<0.000000e+00> : vector<8x32xf32>
    %161 = tpu.matmul %160, %143, %cst_75 {dimension_numbers = #tpu.dot_dimension_numbers<[1], [0], [0], [1], [0, 0, 1, 1], [], []>} : vector<8x16xf32>, vector<16x32xf32>, vector<8x32xf32> -> vector<8x32xf32>
    %162 = arith.maximumf %152, %161 : vector<8x32xf32>
    %163 = tpu.iota {dimensions = array<i32: 0>} : vector<2x8xi32>
    %164 = tpu.iota {dimensions = array<i32: 1>} : vector<2x8xi32>
    %c4_i32 = arith.constant 4 : i32
    %165 = vector.broadcast %c4_i32 : i32 to vector<2x8xi32>
    %166 = arith.muli %163, %165 : vector<2x8xi32>
    %167 = arith.cmpi sge, %164, %166 : vector<2x8xi32>
    %c1_i32_76 = arith.constant 1 : i32
    %168 = vector.broadcast %c1_i32_76 : i32 to vector<2x8xi32>
    %169 = arith.addi %163, %168 : vector<2x8xi32>
    %c4_i32_77 = arith.constant 4 : i32
    %170 = vector.broadcast %c4_i32_77 : i32 to vector<2x8xi32>
    %171 = arith.muli %169, %170 : vector<2x8xi32>
    %172 = arith.cmpi slt, %164, %171 : vector<2x8xi32>
    %173 = arith.andi %167, %172 : vector<2x8xi1>
    %cst_78 = arith.constant 1.000000e+00 : f32
    %cst_79 = arith.constant 0.000000e+00 : f32
    %174 = vector.broadcast %cst_78 : f32 to vector<2x8xf32>
    %175 = vector.broadcast %cst_79 : f32 to vector<2x8xf32>
    %176 = arith.select %173, %174, %175 : vector<2x8xi1>, vector<2x8xf32>
    %cst_80 = arith.constant 2.500000e-01 : f32
    %177 = vector.broadcast %cst_80 : f32 to vector<2x8xf32>
    %178 = arith.mulf %176, %177 : vector<2x8xf32>
    %cst_81 = arith.constant dense<0.000000e+00> : vector<2x32xf32>
    %179 = tpu.matmul %178, %162, %cst_81 {dimension_numbers = #tpu.dot_dimension_numbers<[1], [0], [0], [1], [0, 0, 1, 1], [], []>} : vector<2x8xf32>, vector<8x32xf32>, vector<2x32xf32> -> vector<2x32xf32>
    %c296 = arith.constant 296 : index
    %c0_82 = arith.constant 0 : index
    %180 = vector.load %arg1[%c296, %c0_82] : memref<424x64xf32, #tpu.memory_space<vmem>>, vector<32x64xf32>
    %cst_83 = arith.constant dense<0.000000e+00> : vector<2x64xf32>
    %181 = tpu.matmul %179, %180, %cst_83 {dimension_numbers = #tpu.dot_dimension_numbers<[1], [0], [0], [1], [0, 0, 1, 1], [], []>} : vector<2x32xf32>, vector<32x64xf32>, vector<2x64xf32> -> vector<2x64xf32>
    %c6 = arith.constant 6 : index
    %c0_84 = arith.constant 0 : index
    %182 = vector.load %arg2[%c6, %c0_84] : memref<16x64xf32, #tpu.memory_space<vmem>>, vector<1x64xf32>
    %183 = vector.broadcast %182 : vector<1x64xf32> to vector<2x64xf32>
    %184 = arith.addf %181, %183 : vector<2x64xf32>
    %cst_85 = arith.constant 0.000000e+00 : f32
    %185 = vector.broadcast %cst_85 : f32 to vector<2x64xf32>
    %186 = arith.maximumf %184, %185 : vector<2x64xf32>
    %c328 = arith.constant 328 : index
    %c0_86 = arith.constant 0 : index
    %187 = vector.load %arg1[%c328, %c0_86] : memref<424x64xf32, #tpu.memory_space<vmem>>, vector<64x32xf32>
    %cst_87 = arith.constant dense<0.000000e+00> : vector<2x32xf32>
    %188 = tpu.matmul %186, %187, %cst_87 {dimension_numbers = #tpu.dot_dimension_numbers<[1], [0], [0], [1], [0, 0, 1, 1], [], []>} : vector<2x64xf32>, vector<64x32xf32>, vector<2x32xf32> -> vector<2x32xf32>
    %c7 = arith.constant 7 : index
    %c0_88 = arith.constant 0 : index
    %189 = vector.load %arg2[%c7, %c0_88] : memref<16x64xf32, #tpu.memory_space<vmem>>, vector<1x32xf32>
    %190 = vector.broadcast %189 : vector<1x32xf32> to vector<2x32xf32>
    %191 = arith.addf %188, %190 : vector<2x32xf32>
    %cst_89 = arith.constant 0.000000e+00 : f32
    %192 = vector.broadcast %cst_89 : f32 to vector<2x32xf32>
    %193 = arith.maximumf %191, %192 : vector<2x32xf32>
    %c392 = arith.constant 392 : index
    %c0_90 = arith.constant 0 : index
    %194 = vector.load %arg1[%c392, %c0_90] : memref<424x64xf32, #tpu.memory_space<vmem>>, vector<32x5xf32>
    %cst_91 = arith.constant dense<0.000000e+00> : vector<2x5xf32>
    %195 = tpu.matmul %193, %194, %cst_91 {dimension_numbers = #tpu.dot_dimension_numbers<[1], [0], [0], [1], [0, 0, 1, 1], [], []>} : vector<2x32xf32>, vector<32x5xf32>, vector<2x5xf32> -> vector<2x5xf32>
    %c8_92 = arith.constant 8 : index
    %c0_93 = arith.constant 0 : index
    %196 = vector.load %arg2[%c8_92, %c0_93] : memref<16x64xf32, #tpu.memory_space<vmem>>, vector<1x5xf32>
    %197 = vector.broadcast %196 : vector<1x5xf32> to vector<2x5xf32>
    %198 = arith.addf %195, %197 : vector<2x5xf32>
    %c0_94 = arith.constant 0 : index
    %c0_95 = arith.constant 0 : index
    %199 = vector.load %arg3[%c0_94, %c0_95] : memref<2x5xf32, #tpu.memory_space<vmem>>, vector<2x5xf32>
    tpu.vector_store %arg3[%c0_94, %c0_95], %198 {strides = array<i32>} : memref<2x5xf32, #tpu.memory_space<vmem>>, vector<2x5xf32>,
    return
  }
}

</mosaic_0001>

<bundles_post_ra>
// kernel: tpu_custom_call.1
= control target key start
LH: loop header
LB: loop body
LE: loop exit
PB: predicated region body
PF: predicated region fallthrough
CT: control target
= control target key end

     0   :  { %vm25_vm0 = vcmask 130048   ;;  %v15_v1 = vlaneseq  ;;  %s1499_s0 = inlined_call_operand.vmem [shape: f32[2,4,16], index: 0, kind: input, shape index: {}]   ;;  %s1500_s1 = inlined_call_operand.vmem [shape: f32[424,64], index: 1, kind: input, shape index: {}]   ;;  %s1501_s2 = inlined_call_operand.vmem [shape: f32[16,64], index: 2, kind: input, shape index: {}]   ;;  %s1502_s3 = inlined_call_operand.hbm [shape: f32[2,5], index: 3, kind: output, shape index: {}]  }
   0x1   :  { %v24_v0 = vld [vmem:[%s1499_s0] sm:$0xf]  ;;  %v1002_v2 = vld [vmem:[%s1499_s0 + $0x4] sm:$0xf] }
   0x2   :  { %999 = vmatpush.xpose.msk.msra.mxu0 %vm25_vm0, %v24_v0  ;;  %1003 = vmatpush.xpose.msk.msra.mxu1 %vm25_vm0, %v1002_v2  ;;  %v1134_v3 = vshrl.u32 %v15_v1, 7  ;;  %v1136_v4 = vand.u32 127, %v15_v1 }
   0x4   :  { %vm20_vm1 = vcmp.eq.s32.totalorder %v1134_v3, %v1136_v4  ;;  %v1141_v5 = vadd.s32 8, %v1134_v3 }
   0x5   :  { %8 = vsyncpa [#allocation3], 0  ;;  %v1104_v6 = vmov 0.0   ;;  %v86_v9 = vld [vmem:[%s1500_s1] sm:$0xf]  ;;  %vm102_vm3 = vcmask 1043456  }
   0x6   :  { %v22_v7 = vsel %vm20_vm1, 1.0, %v1104_v6  ;;  %vm21_vm2 = vcmp.eq.s32.totalorder %v1141_v5, %v1136_v4  ;;  %1006 = vmatpush.msk.msra.mxu2 %vm102_vm3, %v86_v9  ;;  %v287_v10 = vld [vmem:[%s1500_s1 + $0x40] sm:$0xff]  ;;  %vm89_vm4 = vcmask 31744   ;;  %v286_v15 = vld [vmem:[%s1500_s1 + $0x38] sm:$0xff]  ;;  %v285_v16 = vld [vmem:[%s1500_s1 + $0x30] sm:$0xff]  ;;  %vm193_vm5 = vcmask 261120  }
   0x7   :  { %1000 = vmatmul.msk.f32.vlgmr.msra.gmra.mxu0 %vm25_vm0, %v22_v7  ;;  %1004 = vmatmul.msk.f32.vlgmr.msra.gmra.mxu1 %vm25_vm0, %v22_v7  ;;  %v23_v8 = vsel %vm21_vm2, 1.0, %v1104_v6  ;;  %v284_v17 = vld [vmem:[%s1500_s1 + $0x28] sm:$0xff]  ;;  %v1069_v18 = vld [vmem:[%s1501_s2] ss:$0 sm:$0xff]  ;;  %v1011_v28 = vadd.s32 4294967295, %v1134_v3  ;;  %v1183_v31 = vadd.s32 1, %v1134_v3 }
   0x8   :  { %312 = vmatpush.msrb.mxu1 %v287_v10  ;;  %vm157_vm7 = vcmp.ne.s32.totalorder %v1134_v3, 0  ;;  %v150_v33 = vadd.s32 1, %v1141_v5  ;;  %v1208_v36 = vadd.s32 4294967295, %v1141_v5  ;;  %v139_v37 = vadd.s32 16, %v1134_v3  ;;  %v283_v49 = vld [vmem:[%s1500_s1 + $0x20] sm:$0xff]  ;;  %v282_v50 = vld [vmem:[%s1500_s1 + $0x18] sm:$0xff] }
   0x9   :  { %vm145_vm6 = vcmp.eq.s32.totalorder %v1136_v4, %v1011_v28  ;;  %vm153_vm9 = vcmp.eq.s32.totalorder %v1136_v4, %v1183_v31  ;;  %vm166_vm11 = vcmp.ne.s32.totalorder %v1141_v5, 15  ;;  %v140_v42 = vadd.s32 24, %v1134_v3  ;;  %v373_v51 = vld [vmem:[%s1500_s1 + $0x60] sm:$0xff]  ;;  %353 = vmatpush.msrb.mxu2 %v283_v49  ;;  %v372_v52 = vld [vmem:[%s1500_s1 + $0x58] sm:$0xff]  ;;  %v281_v53 = vld [vmem:[%s1500_s1 + $0x10] sm:$0xff]  ;;  %s1105_s27 = smov [#allocation2]  }
   0xa   :  { %313 = vmatpush.msrb.mxu1 %v286_v15  ;;  %vm161_vm8 = vmand %vm145_vm6, %vm157_vm7  ;;  %v235_v35 = vsel %vm153_vm9, 1.0, %v1104_v6  ;;  %vm154_vm10 = vcmp.eq.s32.totalorder %v1136_v4, %v150_v33  ;;  %vm146_vm12 = vcmp.eq.s32.totalorder %v1136_v4, %v1208_v36  ;;  %v1013_v38 = vadd.s32 4294967295, %v139_v37  ;;  %v280_v54 = vld [vmem:[%s1500_s1 + $0x8] sm:$0xff]  ;;  %v371_v55 = vld [vmem:[%s1500_s1 + $0x50] sm:$0xff]  ;;  %s988_s28 = sshll.u32 %s1105_s27, 4  ;;  %s989_s28 = int_to_ptr.vmem [resolvable:$true] %s988_s28 }
   0xb   :  { %v1201_v34 = vsel %vm161_vm8, 1.0, %v1104_v6  ;;  %vm170_vm13 = vmand %vm154_vm10, %vm166_vm11  ;;  %v190_v39 = vsel %vm146_vm12, 1.0, %v1104_v6  ;;  %v151_v41 = vadd.s32 1, %v139_v37  ;;  %vm175_vm15 = vcmp.ne.s32.totalorder %v139_v37, 16  ;;  %354 = vmatpush.msrb.mxu2 %v282_v50  ;;  %v370_v56 = vld [vmem:[%s1500_s1 + $0x48] sm:$0xff]  ;;  %v432_v1 = vld [vmem:[%s1500_s1 + $0x80] sm:$0xff] }
   0xc   :  { %314 = vmatpush.msrb.mxu1 %v285_v16  ;;  %v1225_v40 = vsel %vm170_vm13, 1.0, %v1104_v6  ;;  %vm147_vm14 = vcmp.eq.s32.totalorder %v1136_v4, %v1013_v38  ;;  %v152_v43 = vadd.s32 1, %v140_v42  ;;  %v1014_v46 = vadd.s32 4294967295, %v140_v42  ;;  %v431_v2 = vld [vmem:[%s1500_s1 + $0x78] sm:$0xff]  ;;  %v430_v7 = vld [vmem:[%s1500_s1 + $0x70] sm:$0xff] }
   0xd   :  { %vm179_vm1 = vmand %vm147_vm14, %vm175_vm15  ;;  %vm155_vm2 = vcmp.eq.s32.totalorder %v1136_v4, %v151_v41  ;;  %355 = vmatpush.msrb.mxu2 %v281_v53  ;;  %v1071_v49 = vld [vmem:[%s1501_s2 + $0x2] ss:$0 sm:$0xff]  ;;  %vm593_vm14 = vcmp.ne.s32.totalorder %v1134_v3, 7  ;;  %v667_v36 = vld [vmem:[%s1500_s1 + $0xb8] sm:$0xff] }
   0xe   :  { %315 = vmatpush.msrb.mxu1 %v284_v17  ;;  %v191_v44 = vsel %vm179_vm1, 1.0, %v1104_v6  ;;  %v237_v45 = vsel %vm155_vm2, 1.0, %v1104_v6  ;;  %vm156_vm3 = vcmp.eq.s32.totalorder %v1136_v4, %v152_v43  ;;  %vm148_vm6 = vcmp.eq.s32.totalorder %v1136_v4, %v1014_v46  ;;  %vm595_vm15 = vmand %vm153_vm9, %vm593_vm14 }
   0xf   :  { %1001 = vmatmul.msk.f32.gmra.mxu0 %vm25_vm0, %v23_v8  ;;  %1005 = vmatmul.msk.f32.gmra.mxu1 %vm25_vm0, %v23_v8  ;;  %v192_v47 = vsel %vm148_vm6, 1.0, %v1104_v6  ;;  %v429_v8 = vld [vmem:[%s1500_s1 + $0x68] sm:$0xff]  ;;  %vm598_vm1 = vcmp.ne.s32.totalorder %v1141_v5, 8  ;;  %vm981_vm6 = vcmask 33792  }
  0x10   :  { %356 = vmatpush.msrb.mxu2 %v280_v54  ;;  %vm600_vm9 = vmand %vm146_vm12, %vm598_vm1 }
  0x84   :  { %v52_v11 = vpop.f32.mrf.mxu0  ;;  %v80_v13 = vpop.f32.mrf.mxu1 }
  0x85   :  { %1007 = vmatmul.msk.f32.vlgmr.msra.gmra.mxu2 %vm89_vm4, %v52_v11 }
  0x8c   :  { %v55_v12 = vpop.f32.mrf.mxu0  ;;  %v83_v14 = vpop.f32.mrf.mxu1 }
  0x8d   :  { %1008 = vmatmul.msk.f32.gmra.mxu2 %vm89_vm4, %v55_v12 }
  0x95   :  { %1009 = vmatmul.msk.f32.gmra.mxu2 %vm89_vm4, %v80_v13  ;;  %v1070_v13 = vld [vmem:[%s1501_s2 + $0x1] ss:$0 sm:$0xff] }
  0x9d   :  { %1010 = vmatmul.msk.f32.gmra.mxu2 %vm89_vm4, %v83_v14  ;;  %vm184_vm4 = vcmp.ne.s32.totalorder %v140_v42, 31 }
  0x9e   :  { %vm188_vm7 = vmand %vm156_vm3, %vm184_vm4  ;;  %vm863_vm3 = vcmask 64512   ;;  %vm927_vm4 = vcmask 523264  }
  0x9f   :  { %v238_v48 = vsel %vm188_vm7, 1.0, %v1104_v6 }
 0x108   :  { %v123_v19 = vpop.f32.mrf.mxu2 }
 0x109   :  { %v124_v20 = vadd.f32 %v1069_v18, %v123_v19 }
 0x10b   :  { %v1169_v21 = vmax.f32 %v124_v20, 0.0 }
 0x10d   :  { %1023 = vmatmul.msk.f32.vlgmr.msrb.gmra.mxu1 %vm193_vm5, %v1169_v21 }
 0x110   :  { %v126_v22 = vpop.f32.mrf.mxu2 }
 0x111   :  { %v127_v23 = vadd.f32 %v1069_v18, %v126_v22 }
 0x113   :  { %v1173_v24 = vmax.f32 %v127_v23, 0.0 }
 0x115   :  { %1024 = vmatmul.msk.f32.gmra.mxu1 %vm193_vm5, %v1173_v24 }
 0x118   :  { %v129_v25 = vpop.f32.mrf.mxu2 }
 0x119   :  { %v130_v26 = vadd.f32 %v1069_v18, %v129_v25 }
 0x11b   :  { %v1177_v27 = vmax.f32 %v130_v26, 0.0 }
 0x11d   :  { %1025 = vmatmul.msk.f32.gmra.mxu1 %vm193_vm5, %v1177_v27 }
 0x120   :  { %v132_v29 = vpop.f32.mrf.mxu2 }
 0x121   :  { %v133_v30 = vadd.f32 %v1069_v18, %v132_v29 }
 0x123   :  { %v1185_v32 = vmax.f32 %v133_v30, 0.0 }
 0x125   :  { %218 = vmatpush.msra.mxu3 %v1185_v32  ;;  %263 = vmatpush.msrb.mxu0 %v1185_v32 }
 0x126   :  { %1026 = vmatmul.msk.f32.gmra.mxu1 %vm193_vm5, %v1185_v32 }
 0x127   :  { %219 = vmatpush.msra.mxu3 %v1177_v27  ;;  %264 = vmatpush.msrb.mxu0 %v1177_v27 }
 0x129   :  { %220 = vmatpush.msra.mxu3 %v1173_v24  ;;  %265 = vmatpush.msrb.mxu0 %v1173_v24 }
 0x12b   :  { %221 = vmatpush.msra.mxu3 %v1169_v21  ;;  %266 = vmatpush.msrb.mxu0 %v1169_v21 }
 0x12c   :  { %1015 = vmatmul.msk.f32.vlgmr.msra.gmra.mxu3 %vm193_vm5, %v1201_v34  ;;  %1019 = vmatmul.msk.f32.vlgmr.msrb.gmra.mxu0 %vm193_vm5, %v235_v35 }
 0x12d   :  { %398 = vmatpush.msrb.mxu3 %v373_v51  ;;  %459 = vmatpush.msra.mxu0 %v432_v1 }
 0x12f   :  { %399 = vmatpush.msrb.mxu3 %v372_v52  ;;  %460 = vmatpush.msra.mxu0 %v431_v2  ;;  %v484_v52 = vmul.u32 2, %v1134_v3 }
 0x131   :  { %400 = vmatpush.msrb.mxu3 %v371_v55  ;;  %461 = vmatpush.msra.mxu0 %v430_v7  ;;  %v485_v55 = vmul.u32 2, %v1141_v5  ;;  %vm486_vm10 = vcmp.eq.s32.totalorder %v1136_v4, %v484_v52  ;;  %v559_v7 = vld [vmem:[%s1500_s1 + $0xa0] sm:$0xff] }
 0x132   :  { %v1310_v2 = vsel %vm486_vm10, 1.0, %v1104_v6  ;;  %v668_v5 = vld [vmem:[%s1500_s1 + $0xc0] sm:$0xff] }
 0x133   :  { %401 = vmatpush.msrb.mxu3 %v370_v56  ;;  %462 = vmatpush.msra.mxu0 %v429_v8  ;;  %vm487_vm13 = vcmp.eq.s32.totalorder %v1136_v4, %v485_v55 }
 0x134   :  { %1016 = vmatmul.msk.f32.gmra.mxu3 %vm193_vm5, %v190_v39  ;;  %1020 = vmatmul.msk.f32.gmra.mxu0 %vm193_vm5, %v1225_v40  ;;  %v489_v8 = vsel %vm487_vm13, 1.0, %v1104_v6 }
 0x13c   :  { %1017 = vmatmul.msk.f32.gmra.mxu3 %vm193_vm5, %v191_v44  ;;  %1021 = vmatmul.msk.f32.gmra.mxu0 %vm193_vm5, %v237_v45 }
 0x144   :  { %1018 = vmatmul.msk.f32.gmra.mxu3 %vm193_vm5, %v192_v47  ;;  %1022 = vmatmul.msk.f32.gmra.mxu0 %vm193_vm5, %v238_v48 }
 0x18a   :  { %v317_v9 = vpop.f32.mrf.mxu1 }
 0x192   :  { %v320_v14 = vpop.f32.mrf.mxu1 }
 0x19a   :  { %v323_v23 = vpop.f32.mrf.mxu1 }
 0x1a3   :  { %v326_v37 = vpop.f32.mrf.mxu1 }
 0x1a9   :  { %v268_v57 = vpop.f32.mrf.mxu0 }
 0x1aa   :  { %1031 = vmatmul.msk.f32.vlgmr.msrb.gmra.mxu3 %vm193_vm5, %v268_v57 }
 0x1af   :  { %v223_v58 = vpop.f32.mrf.mxu3 }
 0x1b0   :  { %1027 = vmatmul.msk.f32.vlgmr.msrb.gmra.mxu2 %vm193_vm5, %v223_v58 }
 0x1b1   :  { %v271_v59 = vpop.f32.mrf.mxu0 }
 0x1b2   :  { %1032 = vmatmul.msk.f32.gmra.mxu3 %vm193_vm5, %v271_v59  ;;  %v519_v59 = vadd.s32 1, %v484_v52 }
 0x1b4   :  { %vm521_vm8 = vcmp.eq.s32.totalorder %v1136_v4, %v519_v59 }
 0x1b7   :  { %v226_v60 = vpop.f32.mrf.mxu3 }
 0x1b8   :  { %1028 = vmatmul.msk.f32.gmra.mxu2 %vm193_vm5, %v226_v60 }
 0x1b9   :  { %v274_v61 = vpop.f32.mrf.mxu0 }
 0x1ba   :  { %1033 = vmatmul.msk.f32.gmra.mxu3 %vm193_vm5, %v274_v61 }
 0x1bf   :  { %v229_v62 = vpop.f32.mrf.mxu3 }
 0x1c0   :  { %1029 = vmatmul.msk.f32.gmra.mxu2 %vm193_vm5, %v229_v62  ;;  %v520_v62 = vadd.s32 1, %v485_v55 }
 0x1c1   :  { %v277_v63 = vpop.f32.mrf.mxu0 }
 0x1c2   :  { %1034 = vmatmul.msk.f32.gmra.mxu3 %vm193_vm5, %v277_v63  ;;  %vm522_vm11 = vcmp.eq.s32.totalorder %v1136_v4, %v520_v62 }
 0x1c7   :  { %v232_v0 = vpop.f32.mrf.mxu3 }
 0x1c8   :  { %1030 = vmatmul.msk.f32.gmra.mxu2 %vm193_vm5, %v232_v0 }
 0x22d   :  { %v403_v10 = vpop.f32.mrf.mxu3 }
 0x233   :  { %v358_v11 = vpop.f32.mrf.mxu2 }
 0x234   :  { %v359_v12 = vadd.f32 %v358_v11, %v317_v9  ;;  %v557_v9 = vld [vmem:[%s1500_s1 + $0x90] sm:$0xff] }
 0x235   :  { %v406_v16 = vpop.f32.mrf.mxu3 }
 0x236   :  { %v415_v15 = vadd.f32 %v403_v10, %v359_v12  ;;  %v556_v10 = vld [vmem:[%s1500_s1 + $0x88] sm:$0xff] }
 0x238   :  { %v421_v17 = vadd.f32 %v1070_v13, %v415_v15 }
 0x23a   :  { %v425_v18 = vmax.f32 %v421_v17, 0.0  ;;  %v672_v17 = vld [vmem:[%s1500_s1 + $0xe0] sm:$0xff] }
 0x23b   :  { %v361_v19 = vpop.f32.mrf.mxu2  ;;  %691 = vmatpush.msrb.mxu0 %v672_v17 }
 0x23c   :  { %v362_v20 = vadd.f32 %v361_v19, %v320_v14  ;;  %1035 = vmatmul.msk.f32.vlgmr.msra.gmra.mxu0 %vm193_vm5, %v425_v18  ;;  %v671_v18 = vld [vmem:[%s1500_s1 + $0xd8] sm:$0xff]  ;;  %v670_v19 = vld [vmem:[%s1500_s1 + $0xd0] sm:$0xff] }
 0x23d   :  { %v409_v26 = vpop.f32.mrf.mxu3  ;;  %692 = vmatpush.msrb.mxu0 %v671_v18 }
 0x23e   :  { %v416_v22 = vadd.f32 %v406_v16, %v362_v20  ;;  %v669_v20 = vld [vmem:[%s1500_s1 + $0xc8] sm:$0xff] }
 0x23f   :  { %693 = vmatpush.msrb.mxu0 %v670_v19 }
 0x240   :  { %v422_v25 = vadd.f32 %v1070_v13, %v416_v22  ;;  %v1072_v22 = vld [vmem:[%s1501_s2 + $0x3] ss:$0 sm:$0xff] }
 0x241   :  { %694 = vmatpush.msrb.mxu0 %v669_v20 }
 0x242   :  { %v426_v28 = vmax.f32 %v422_v25, 0.0 }
 0x243   :  { %v364_v29 = vpop.f32.mrf.mxu2 }
 0x244   :  { %v365_v30 = vadd.f32 %v364_v29, %v323_v23  ;;  %1036 = vmatmul.msk.f32.gmra.mxu0 %vm193_vm5, %v426_v28 }
 0x245   :  { %v412_v41 = vpop.f32.mrf.mxu3 }
 0x246   :  { %v417_v33 = vadd.f32 %v409_v26, %v365_v30 }
 0x248   :  { %v423_v35 = vadd.f32 %v1070_v13, %v417_v33  ;;  %v634_v33 = vsel %vm595_vm15, 1.0, %v1104_v6 }
 0x24a   :  { %v427_v38 = vmax.f32 %v423_v35, 0.0  ;;  %v604_v35 = vsel %vm600_vm9, 1.0, %v1104_v6 }
 0x24b   :  { %v367_v39 = vpop.f32.mrf.mxu2 }
 0x24c   :  { %v368_v42 = vadd.f32 %v367_v39, %v326_v37  ;;  %1037 = vmatmul.msk.f32.gmra.mxu0 %vm193_vm5, %v427_v38  ;;  %v733_v37 = vld [vmem:[%s1500_s1 + $0xf8] sm:$0xff]  ;;  %v732_v38 = vld [vmem:[%s1500_s1 + $0xf0] sm:$0xff]  ;;  %v665_v39 = vld [vmem:[%s1500_s1 + $0xa8] sm:$0xff] }
 0x24e   :  { %v418_v43 = vadd.f32 %v412_v41, %v368_v42  ;;  %v731_v41 = vld [vmem:[%s1500_s1 + $0xe8] sm:$0xff] }
 0x250   :  { %v424_v44 = vadd.f32 %v1070_v13, %v418_v43 }
 0x252   :  { %v428_v45 = vmax.f32 %v424_v44, 0.0 }
 0x254   :  { %1038 = vmatmul.msk.f32.gmra.mxu0 %vm193_vm5, %v428_v45 }
 0x2b9   :  { %v464_v46 = vpop.f32.mrf.mxu0 }
 0x2ba   :  { %v465_v56 = vadd.f32 %v1071_v49, %v464_v46  ;;  %v775_v46 = vld [vmem:[%s1500_s1 + $0x120] sm:$0xff] }
 0x2bc   :  { %v476_v63 = vmax.f32 %v465_v56, 0.0 }
 0x2c1   :  { %v467_v47 = vpop.f32.mrf.mxu0 }
 0x2c2   :  { %v468_v53 = vadd.f32 %v1071_v49, %v467_v47  ;;  %v774_v47 = vld [vmem:[%s1500_s1 + $0x118] sm:$0xff] }
 0x2c4   :  { %v477_v60 = vmax.f32 %v468_v53, 0.0  ;;  %v1073_v53 = vld [vmem:[%s1501_s2 + $0x4] ss:$0 sm:$0xff] }
 0x2c6   :  { %v481_v1 = vadd.f32 %v477_v60, %v1173_v24  ;;  %v524_v24 = vsel %vm522_vm11, 1.0, %v1104_v6 }
 0x2c9   :  { %v470_v48 = vpop.f32.mrf.mxu0 }
 0x2ca   :  { %v471_v50 = vadd.f32 %v1071_v49, %v470_v48  ;;  %v773_v48 = vld [vmem:[%s1500_s1 + $0x110] sm:$0xff] }
 0x2cc   :  { %v478_v57 = vmax.f32 %v471_v50, 0.0 }
 0x2ce   :  { %v482_v0 = vadd.f32 %v478_v57, %v1177_v27  ;;  %v1307_v27 = vsel %vm521_vm8, 1.0, %v1104_v6 }
 0x2d1   :  { %v473_v51 = vpop.f32.mrf.mxu0 }
 0x2d2   :  { %v474_v54 = vadd.f32 %v1071_v49, %v473_v51  ;;  %v772_v49 = vld [vmem:[%s1500_s1 + $0x108] sm:$0xff] }
 0x2d4   :  { %v479_v58 = vmax.f32 %v474_v54, 0.0 }
 0x2d6   :  { %v483_v61 = vadd.f32 %v479_v58, %v1185_v32  ;;  %v480_v32 = vadd.f32 %v476_v63, %v1169_v21  ;;  %v558_v21 = vld [vmem:[%s1500_s1 + $0x98] sm:$0xff] }
 0x2d8   :  { %508 = vmatpush.msra.mxu1 %v483_v61  ;;  %543 = vmatpush.msra.mxu2 %v483_v61 }
 0x2d9   :  { %1063 = vmatpush.msra.mxu3 %v483_v61 }
 0x2da   :  { %509 = vmatpush.msra.mxu1 %v482_v0  ;;  %544 = vmatpush.msra.mxu2 %v482_v0 }
 0x2db   :  { %1064 = vmatpush.msra.mxu3 %v482_v0 }
 0x2dc   :  { %510 = vmatpush.msra.mxu1 %v481_v1  ;;  %545 = vmatpush.msra.mxu2 %v481_v1 }
 0x2dd   :  { %1065 = vmatpush.msra.mxu3 %v481_v1 }
 0x2de   :  { %511 = vmatpush.msra.mxu1 %v480_v32  ;;  %546 = vmatpush.msra.mxu2 %v480_v32 }
 0x2df   :  { %1066 = vmatpush.msra.mxu3 %v480_v32  ;;  %1041 = vmatmul.msk.f32.vlgmr.msra.gmra.mxu2 %vm193_vm5, %v1307_v27  ;;  %v1074_v32 = vld [vmem:[%s1501_s2 + $0x5] ss:$0 sm:$0xff] }
 0x2e0   :  { %1039 = vmatmul.msk.f32.vlgmr.msra.gmra.mxu1 %vm193_vm5, %v1310_v2  ;;  %1042 = vmatmul.msk.f32.vlgmr.msra.gmra.mxu3 %vm193_vm5, %v524_v24 }
 0x2e1   :  { %580 = vmatpush.msrb.mxu1 %v559_v7 }
 0x2e3   :  { %581 = vmatpush.msrb.mxu1 %v558_v21 }
 0x2e5   :  { %582 = vmatpush.msrb.mxu1 %v557_v9 }
 0x2e7   :  { %583 = vmatpush.msrb.mxu1 %v556_v10 }
 0x2e8   :  { %1040 = vmatmul.msk.f32.gmra.mxu1 %vm193_vm5, %v489_v8 }
 0x2e9   :  { %720 = vmatpush.msra.mxu1 %v668_v5 }
 0x2eb   :  { %721 = vmatpush.msra.mxu1 %v667_v36  ;;  %v953_v36 = vld [vmem:[%s1500_s1 + $0x190] sm:$0xff] }
 0x35d   :  { %v513_v11 = vpop.f32.mrf.mxu1 }
 0x362   :  { %v548_v12 = vpop.f32.mrf.mxu2 }
 0x363   :  { %v554_v13 = vmax.f32 %v513_v11, %v548_v12  ;;  %v551_v15 = vpop.f32.mrf.mxu3  ;;  %v890_v12 = vld [vmem:[%s1500_s1 + $0x140] sm:$0xff] }
 0x365   :  { %1043 = vmatmul.msk.f32.vlgmr.msrb.gmra.mxu1 %vm193_vm5, %v554_v13  ;;  %v516_v14 = vpop.f32.mrf.mxu1  ;;  %v889_v13 = vld [vmem:[%s1500_s1 + $0x138] sm:$0xff] }
 0x366   :  { %v555_v16 = vmax.f32 %v516_v14, %v551_v15  ;;  %v888_v14 = vld [vmem:[%s1500_s1 + $0x130] sm:$0xff]  ;;  %v858_v15 = vmul.u32 4, %v1183_v31  ;;  %v923_v31 = vld [vmem:[%s1500_s1 + $0x178] sm:$0xff] }
 0x368   :  { %vm859_vm12 = vcmp.lt.s32.totalorder %v1136_v4, %v858_v15 }
 0x36d   :  { %1044 = vmatmul.msk.f32.gmra.mxu1 %vm193_vm5, %v555_v16 }
 0x3e2   :  { %v585_v23 = vpop.f32.mrf.mxu1 }
 0x3e3   :  { %v586_v25 = vadd.f32 %v1072_v22, %v585_v23  ;;  %v919_v23 = vld [vmem:[%s1500_s1 + $0x158] sm:$0xff] }
 0x3e5   :  { %v1350_v26 = vmax.f32 %v586_v25, 0.0 }
 0x3e7   :  { %1049 = vmatmul.msk.f32.vlgmr.msrb.gmra.mxu0 %vm193_vm5, %v1350_v26 }
 0x3ea   :  { %v588_v28 = vpop.f32.mrf.mxu1 }
 0x3eb   :  { %v589_v29 = vadd.f32 %v1072_v22, %v588_v28  ;;  %v920_v22 = vld [vmem:[%s1500_s1 + $0x160] sm:$0xff]  ;;  %v917_v28 = vld [vmem:[%s1500_s1 + $0x148] sm:$0xff] }
 0x3ed   :  { %v1358_v30 = vmax.f32 %v589_v29, 0.0  ;;  %v955_v29 = vld [vmem:[%s1500_s1 + $0x1a0] sm:$0xff] }
 0x3ef   :  { %625 = vmatpush.msrb.mxu3 %v1358_v30  ;;  %656 = vmatpush.msrb.mxu2 %v1358_v30 }
 0x3f0   :  { %1050 = vmatmul.msk.f32.gmra.mxu0 %vm193_vm5, %v1358_v30 }
 0x3f1   :  { %626 = vmatpush.msrb.mxu3 %v1350_v26  ;;  %657 = vmatpush.msrb.mxu2 %v1350_v26 }
 0x3f2   :  { %1045 = vmatmul.msk.f32.vlgmr.msrb.gmra.mxu3 %vm25_vm0, %v1201_v34  ;;  %1047 = vmatmul.msk.f32.vlgmr.msrb.gmra.mxu2 %vm25_vm0, %v634_v33  ;;  %v734_v34 = vld [vmem:[%s1500_s1 + $0x100] sm:$0xff] }
 0x3f3   :  { %753 = vmatpush.msra.mxu3 %v734_v34  ;;  %796 = vmatpush.msra.mxu2 %v775_v46  ;;  %v1075_v33 = vld [vmem:[%s1501_s2 + $0x6] ss:$0 sm:$0xff] }
 0x3f5   :  { %754 = vmatpush.msra.mxu3 %v733_v37  ;;  %797 = vmatpush.msra.mxu2 %v774_v47  ;;  %v952_v37 = vld [vmem:[%s1500_s1 + $0x188] sm:$0xff] }
 0x3f7   :  { %755 = vmatpush.msra.mxu3 %v732_v38  ;;  %798 = vmatpush.msra.mxu2 %v773_v48 }
 0x3f9   :  { %756 = vmatpush.msra.mxu3 %v731_v41  ;;  %799 = vmatpush.msra.mxu2 %v772_v49 }
 0x3fa   :  { %1046 = vmatmul.msk.f32.gmra.mxu3 %vm25_vm0, %v604_v35  ;;  %1048 = vmatmul.msk.f32.gmra.mxu2 %vm25_vm0, %v1225_v40  ;;  %v666_v40 = vld [vmem:[%s1500_s1 + $0xb0] sm:$0xff] }
 0x3fb   :  { %722 = vmatpush.msra.mxu1 %v666_v40  ;;  %v1076_v40 = vld [vmem:[%s1501_s2 + $0x7] ss:$0 sm:$0xff] }
 0x3fd   :  { %723 = vmatpush.msra.mxu1 %v665_v39 }
 0x464   :  { %v696_v51 = vpop.f32.mrf.mxu0 }
 0x46d   :  { %v699_v59 = vpop.f32.mrf.mxu0 }
 0x475   :  { %v628_v42 = vpop.f32.mrf.mxu3  ;;  %v659_v43 = vpop.f32.mrf.mxu2 }
 0x476   :  { %1051 = vmatmul.msk.f32.vlgmr.msra.gmra.mxu1 %vm193_vm5, %v628_v42  ;;  %1053 = vmatmul.msk.f32.vlgmr.msra.gmra.mxu3 %vm193_vm5, %v659_v43  ;;  %v1077_v42 = vld [vmem:[%s1501_s2 + $0x8] ss:$0 sm:$0xff] }
 0x47d   :  { %v631_v44 = vpop.f32.mrf.mxu3  ;;  %v662_v45 = vpop.f32.mrf.mxu2 }
 0x47e   :  { %1052 = vmatmul.msk.f32.gmra.mxu1 %vm193_vm5, %v631_v44  ;;  %1054 = vmatmul.msk.f32.gmra.mxu3 %vm193_vm5, %v662_v45 }
 0x4f3   :  { %v725_v50 = vpop.f32.mrf.mxu1 }
 0x4f4   :  { %v726_v52 = vadd.f32 %v725_v50, %v696_v51 }
 0x4f9   :  { %v758_v54 = vpop.f32.mrf.mxu3 }
 0x4fa   :  { %v764_v55 = vadd.f32 %v758_v54, %v726_v52 }
 0x4fb   :  { %v728_v57 = vpop.f32.mrf.mxu1 }
 0x4fc   :  { %v768_v56 = vadd.f32 %v1073_v53, %v764_v55  ;;  %v729_v60 = vadd.f32 %v728_v57, %v699_v59 }
 0x4fe   :  { %v770_v58 = vmax.f32 %v768_v56, 0.0 }
 0x500   :  { %1055 = vmatmul.msk.f32.vlgmr.msra.gmra.mxu2 %vm193_vm5, %v770_v58 }
 0x501   :  { %v761_v61 = vpop.f32.mrf.mxu3 }
 0x502   :  { %v765_v62 = vadd.f32 %v761_v61, %v729_v60 }
 0x504   :  { %v769_v63 = vadd.f32 %v1073_v53, %v765_v62 }
 0x506   :  { %v771_v0 = vmax.f32 %v769_v63, 0.0 }
 0x508   :  { %1056 = vmatmul.msk.f32.gmra.mxu2 %vm193_vm5, %v771_v0 }
 0x583   :  { %v801_v1 = vpop.f32.mrf.mxu2 }
 0x584   :  { %v802_v24 = vadd.f32 %v1074_v32, %v801_v1 }
 0x586   :  { %v807_v8 = vmax.f32 %v802_v24, 0.0 }
 0x588   :  { %v809_v11 = vadd.f32 %v807_v8, %v1350_v26  ;;  %v918_v26 = vld [vmem:[%s1500_s1 + $0x150] sm:$0xff] }
 0x58b   :  { %v804_v7 = vpop.f32.mrf.mxu2 }
 0x58c   :  { %v805_v21 = vadd.f32 %v1074_v32, %v804_v7 }
 0x58e   :  { %v808_v9 = vmax.f32 %v805_v21, 0.0 }
 0x590   :  { %v810_v10 = vadd.f32 %v808_v9, %v1358_v30  ;;  %v954_v30 = vld [vmem:[%s1500_s1 + $0x198] sm:$0xff] }
 0x592   :  { %827 = vmatpush.msra.mxu0 %v810_v10  ;;  %849 = vmatpush.msrb.mxu1 %v810_v10 }
 0x594   :  { %828 = vmatpush.msra.mxu0 %v809_v11  ;;  %850 = vmatpush.msrb.mxu1 %v809_v11 }
 0x595   :  { %1057 = vmatmul.msk.f32.vlgmr.msra.gmra.mxu0 %vm25_vm0, %v1310_v2  ;;  %1058 = vmatmul.msk.f32.vlgmr.msrb.gmra.mxu1 %vm25_vm0, %v1307_v27  ;;  %v887_v2 = vld [vmem:[%s1500_s1 + $0x128] sm:$0xff]  ;;  %v856_v27 = vmul.u32 4, %v1134_v3  ;;  %v924_v3 = vld [vmem:[%s1500_s1 + $0x180] sm:$0xff] }
 0x596   :  { %908 = vmatpush.msrb.mxu0 %v890_v12  ;;  %939 = vmatpush.msrb.mxu2 %v924_v3 }
 0x597   :  { %vm857_vm0 = vcmp.ge.s32.totalorder %v1136_v4, %v856_v27  ;;  %v922_v4 = vld [vmem:[%s1500_s1 + $0x170] sm:$0xff]  ;;  %973 = vmatpush.msra.mxu1 %v955_v29 }
 0x598   :  { %909 = vmatpush.msrb.mxu0 %v889_v13  ;;  %vm860_vm2 = vmand %vm857_vm0, %vm859_vm12  ;;  %940 = vmatpush.msrb.mxu2 %v923_v31 }
 0x599   :  { %v861_v16 = vsel %vm860_vm2, 1.0, %v1104_v6  ;;  %v921_v6 = vld [vmem:[%s1500_s1 + $0x168] sm:$0xff]  ;;  %974 = vmatpush.msra.mxu1 %v954_v30  ;;  %s990_s1 = sshll.u32 %s1502_s3, 4  ;;  %s991_s1 = int_to_ptr.hbm [resolvable:$true] %s990_s1 }
 0x59a   :  { %910 = vmatpush.msrb.mxu0 %v888_v14  ;;  %v862_v19 = vmul.f32 0.25, %v861_v16  ;;  %941 = vmatpush.msrb.mxu2 %v922_v4 }
 0x59b   :  { %975 = vmatpush.msra.mxu1 %v953_v36 }
 0x59c   :  { %911 = vmatpush.msrb.mxu0 %v887_v2  ;;  %942 = vmatpush.msrb.mxu2 %v921_v6 }
 0x59d   :  { %976 = vmatpush.msra.mxu1 %v952_v37 }
 0x59e   :  { %943 = vmatpush.msrb.mxu2 %v920_v22 }
 0x5a0   :  { %944 = vmatpush.msrb.mxu2 %v919_v23 }
 0x5a2   :  { %945 = vmatpush.msrb.mxu2 %v918_v26 }
 0x5a4   :  { %946 = vmatpush.msrb.mxu2 %v917_v28 }
 0x612   :  { %v830_v17 = vpop.f32.mrf.mxu0  ;;  %v852_v18 = vpop.f32.mrf.mxu1 }
 0x613   :  { %v855_v20 = vmax.f32 %v830_v17, %v852_v18 }
 0x615   :  { %882 = vmatpush.msrb.mxu3 %v855_v20 }
 0x616   :  { %1059 = vmatmul.msk.f32.vlgmr.msrb.gmra.mxu3 %vm863_vm3, %v862_v19 }
 0x699   :  { %v884_v25 = vpop.f32.mrf.mxu3 }
 0x69a   :  { %1060 = vmatmul.msk.f32.vlgmr.msrb.gmra.mxu0 %vm193_vm5, %v884_v25 }
 0x717   :  { %v913_v35 = vpop.f32.mrf.mxu0 }
 0x718   :  { %v914_v5 = vadd.f32 %v1075_v33, %v913_v35 }
 0x71a   :  { %v916_v34 = vmax.f32 %v914_v5, 0.0 }
 0x71c   :  { %1061 = vmatmul.msk.f32.vlgmr.msrb.gmra.mxu2 %vm927_vm4, %v916_v34 }
 0x79f   :  { %v948_v38 = vpop.f32.mrf.mxu2 }
 0x7a0   :  { %v949_v39 = vadd.f32 %v1076_v40, %v948_v38 }
 0x7a2   :  { %v951_v41 = vmax.f32 %v949_v39, 0.0 }
 0x7a4   :  { %1062 = vmatmul.msk.f32.vlgmr.msra.gmra.mxu1 %vm193_vm5, %v951_v41 }
 0x821   :  { %v978_v43 = vpop.f32.mrf.mxu1 }
 0x822   :  { %v979_v44 = vadd.f32 %v1077_v42, %v978_v43 }
 0x824   :  { %982 = vst.msk [vmem:[#allocation2] sm:$0x3] %vm981_vm6, %v979_v44 }
 0x825   :  { %993 = dma.vmem_to_hbm [thread:$0]  %s989_s28, 32, %s991_s1, [#allocation3]  }
 0x826   :  { %1102 = dma.done.wait [#allocation3], 32  }
 0x827   :  { %1103 = vsyncadd [#allocation3], 4294967264 }
 0x828   :  { %998 = vsyncpa [#allocation3], 1 }

</bundles_post_ra>
